<compile_context>
chip_gen: v6e
topology: v6e:2x2x1
jax: 0.10.0
libtpu: 0.0.40
codegen_flags: <defaults>
</compile_context>

<pallas_src>
import functools

import jax
import jax.numpy as jnp
import numpy as np
from jax import lax
from jax.experimental import pallas as pl
from jax.experimental.pallas import tpu as pltpu

DEFAULT_EPS = 0.1
DEFAULT_MAX_ITER = 50
DEFAULT_THRESH = 0.1

# Padding value for -C/eps: exp(pad) == 0 exactly, but finite so 0*pad != nan.
_PAD_NEG = -1e30


def _round_up(x, m):
    return ((x + m - 1) // m) * m


def _sinkhorn_kernel(mu_ref, nu_ref, negc_ref, dist_ref, pi_ref, *,
                     eps, max_iter, thresh, n_valid, m_valid):
    mu = mu_ref[...]            # (B, Np)     padded with 0
    nu = nu_ref[...]            # (B, Mp)     padded with 0
    negC = negc_ref[...]        # (B, Np, Mp) = -C/eps, padded with _PAD_NEG

    B, Np = mu.shape
    Mp = nu.shape[1]

    row_valid = lax.broadcasted_iota(jnp.int32, (B, Np), 1) < n_valid   # (B, Np)
    col_valid = lax.broadcasted_iota(jnp.int32, (B, Mp), 1) < m_valid   # (B, Mp)

    log_mu = jnp.log(mu + 1e-8)      # padded entries are masked out below
    log_nu = jnp.log(nu + 1e-8)

    # ---- hoisted out of the loop (computed once) ---------------------------
    # Per-row stabilized Gibbs kernel K0_ij = exp(negC_ij - rowmax_i).
    # Padded columns -> exp(-huge) = 0, so they never contribute to any sum.
    rmax = jnp.max(negC, axis=2, keepdims=True)            # (B, Np, 1)
    K0 = jnp.exp(negC - rmax)                              # (B, Np, Mp)
    rmax_v = rmax[:, :, 0]                                 # (B, Np)

    neg_inf = jnp.float32(-jnp.inf)
    # err = eps * mean_b sum_i |du|  < thresh    <=>   sum_{b,i}|du_s| < thresh*B/eps
    thresh_sum = jnp.float32(thresh * float(B) / float(eps))

    def body(carry):
        it, u_s, v_s, _ = carry

        # ---- u update:  u_s_i = log_mu_i - lse_j(negC_ij + v_s_j) ----------
        vmax = jnp.max(jnp.where(col_valid, v_s, neg_inf), axis=1, keepdims=True)
        e_v = jnp.where(col_valid, jnp.exp(v_s - vmax), 0.0)           # (B, Mp)
        # sum_j K0_ij * e_v_j as a batched MXU contraction (MXU was idle before).
        Su = jnp.einsum('bnm,bmo->bno', K0, e_v[:, :, None],
                        preferred_element_type=jnp.float32)[:, :, 0]   # (B, Np)
        u_s_new = log_mu - (rmax_v + vmax + jnp.log(Su))
        u_s_new = jnp.where(row_valid, u_s_new, 0.0)

        # ---- v update (uses new u): v_s_j = log_nu_j - lse_i(negC_ij + u_s_i)
        a_u = u_s_new + rmax_v                          # fold row shift back in
        amax = jnp.max(jnp.where(row_valid, a_u, neg_inf), axis=1, keepdims=True)
        e_u = jnp.where(row_valid, jnp.exp(a_u - amax), 0.0)           # (B, Np)
        Sv = jnp.einsum('bon,bnm->bom', e_u[:, None, :], K0,
                        preferred_element_type=jnp.float32)[:, 0, :]   # (B, Mp)
        v_s_new = log_nu - (amax + jnp.log(Sv))
        v_s_new = jnp.where(col_valid, v_s_new, 0.0)

        err_sum = jnp.sum(jnp.abs(u_s_new - u_s))
        return it + 1, u_s_new, v_s_new, err_sum

    def cond(carry):
        it, _, _, err_sum = carry
        # PyTorch breaks *after* the update when err < thresh.
        return jnp.logical_and(it < max_iter, err_sum >= thresh_sum)

    carry0 = (jnp.int32(0), jnp.zeros_like(mu), jnp.zeros_like(nu),
              jnp.float32(jnp.inf))
    _, u_s, v_s, _ = lax.while_loop(cond, body, carry0)

    # Transport plan: one full-tensor exp, once.  Padded entries -> exactly 0.
    pi = jnp.exp(negC + u_s[:, :, None] + v_s[:, None, :])             # (B, Np, Mp)
    pi_ref[...] = pi.astype(pi_ref.dtype)

    # dist_b = sum(pi * C) = -eps * sum(pi * negC); padded terms are 0 * finite = 0.
    dist_bn = jnp.sum(pi * negC, axis=2)                               # (B, Np)
    dist_ref[...] = ((-eps) * jnp.sum(dist_bn, axis=1))[None, :].astype(dist_ref.dtype)


def _vmem_limit_bytes(big_tensor_bytes):
    try:
        cap = int(pltpu.get_tpu_info().vmem_capacity_bytes)
    except Exception:            # conservative fallback (v7x per-core VMEM)
        cap = 64 << 20
    # Worst case ~4 live (B,Np,Mp) f32 tensors (negC in, K0, pre-exp/pi*negC
    # temporary, pi out) plus headroom; never request more than 85% of chip VMEM.
    want = 4 * big_tensor_bytes + (4 << 20)
    return int(min(int(cap * 0.85), max(want, 8 << 20)))


def entropic_ot(pred, target, C, *, eps=DEFAULT_EPS, max_iter=DEFAULT_MAX_ITER,
                thresh=DEFAULT_THRESH, reduction="mean"):
    if reduction not in ("mean", "sum", "none"):
        raise ValueError(f"unsupported reduction: {reduction!r}")
    B, N = pred.shape
    M = target.shape[1]
    assert C.shape == (B, N, M)

    # Lane-dense padding: sublane dim (N) -> multiple of 8, lane dim (M) -> 128.
    Np = _round_up(N, 8)
    Mp = _round_up(M, 128)

    mu = jnp.pad(pred.astype(jnp.float32), ((0, 0), (0, Np - N)))
    nu = jnp.pad(target.astype(jnp.float32), ((0, 0), (0, Mp - M)))
    # Pre-scale once in the wrapper: the kernel only ever sees -C/eps.
    negC = jnp.pad(C.astype(jnp.float32) * jnp.float32(-1.0 / float(eps)),
                   ((0, 0), (0, Np - N), (0, Mp - M)),
                   constant_values=_PAD_NEG)

    big = B * Np * Mp * 4
    kernel = functools.partial(_sinkhorn_kernel, eps=float(eps),
                               max_iter=int(max_iter), thresh=float(thresh),
                               n_valid=N, m_valid=M)
    # Note: the batch-mean early break of the reference module couples every
    # batch element through the iteration count, so the whole (padded) problem
    # stays resident in one kernel invocation (no grid over B).
    dist_1b, pi_p = pl.pallas_call(
        kernel,
        out_shape=(jax.ShapeDtypeStruct((1, B), jnp.float32),
                   jax.ShapeDtypeStruct((B, Np, Mp), jnp.float32)),
        in_specs=[pl.BlockSpec(memory_space=pltpu.MemorySpace.VMEM)] * 3,
        out_specs=(pl.BlockSpec(memory_space=pltpu.MemorySpace.VMEM),
                   pl.BlockSpec(memory_space=pltpu.MemorySpace.VMEM)),
        compiler_params=pltpu.CompilerParams(
            vmem_limit_bytes=_vmem_limit_bytes(big)),
    )(mu, nu, negC)

    pi = pi_p[:, :N, :M]
    dist_b = dist_1b[0]
    if reduction == "mean":
        dist = jnp.mean(dist_b)
    elif reduction == "sum":
        dist = jnp.sum(dist_b)
    else:  # 'none'
        dist = dist_b
    return dist, pi


def _reference(pred, target, C, eps, max_iter, thresh, reduction):
    """float64 numpy replication of the PyTorch loop (break after update)."""
    mu = np.asarray(pred, dtype=np.float64)
    nu = np.asarray(target, dtype=np.float64)
    Cn = np.asarray(C, dtype=np.float64)
    u = np.zeros_like(mu)
    v = np.zeros_like(nu)

    def Mod(u, v):
        return (-Cn + u[:, :, None] + v[:, None, :]) / eps

    def lse(x, axis):
        m = x.max(axis=axis, keepdims=True)
        return np.log(np.exp(x - m).sum(axis=axis)) + np.squeeze(m, axis=axis)

    for _ in range(max_iter):
        u1 = u
        u = eps * (np.log(mu + 1e-8) - lse(Mod(u, v), -1)) + u
        v = eps * (np.log(nu + 1e-8) - lse(np.swapaxes(Mod(u, v), -2, -1), -1)) + v
        err = np.abs(u - u1).sum(-1).mean()
        if err < thresh:
            break
    pi = np.exp(Mod(u, v))
    dist = (pi * Cn).sum(axis=(-2, -1))
    if reduction == "mean":
        dist = dist.mean()
    elif reduction == "sum":
        dist = dist.sum()
    return dist, pi


if __name__ == "__main__":
    key = jax.random.PRNGKey(0)
    B, N, M = 2, 8, 8
    k1, k2, k3 = jax.random.split(key, 3)
    # distribution histograms (rows sum to 1)
    pred = jax.nn.softmax(jax.random.normal(k1, (B, N)), axis=-1)
    target = jax.nn.softmax(jax.random.normal(k2, (B, M)), axis=-1)
    # non-negative cost matrix
    C = jnp.abs(jax.random.normal(k3, (B, N, M)))

    dist, pi = entropic_ot(pred, target, C, reduction="mean")
    dist = jax.block_until_ready(dist)
    pi = jax.block_until_ready(pi)

    ref_dist, ref_pi = _reference(pred, target, C, DEFAULT_EPS,
                                  DEFAULT_MAX_ITER, DEFAULT_THRESH, "mean")
    assert abs(float(dist) - float(ref_dist)) < 1e-4, (float(dist), float(ref_dist))
    assert np.allclose(np.asarray(pi), ref_pi, atol=1e-4)

    # reduction='none' path
    dist_none, _ = entropic_ot(pred, target, C, reduction="none")
    dist_none = jax.block_until_ready(dist_none)
    ref_none, _ = _reference(pred, target, C, DEFAULT_EPS,
                             DEFAULT_MAX_ITER, DEFAULT_THRESH, "none")
    assert np.allclose(np.asarray(dist_none), ref_none, atol=1e-4)

    print("KERNEL_OK")
</pallas_src>

<mosaic_0001>
module attributes {stable_mosaic.version = 11 : i64} {
  func.func @_sinkhorn_kernel(%arg0: memref<2x8xf32, #tpu.memory_space<vmem>>, %arg1: memref<2x128xf32, #tpu.memory_space<vmem>>, %arg2: memref<2x8x128xf32, #tpu.memory_space<vmem>>, %arg3: memref<1x2xf32, #tpu.memory_space<vmem>>, %arg4: memref<2x8x128xf32, #tpu.memory_space<vmem>>) attributes {dimension_semantics = [], scalar_prefetch = 0 : i64, scratch_operands = 0 : i64, tpu.core_type = #tpu.core_type<tc>} {
    %c0 = arith.constant 0 : index
    %c0_0 = arith.constant 0 : index
    %0 = vector.load %arg0[%c0, %c0_0] : memref<2x8xf32, #tpu.memory_space<vmem>>, vector<2x8xf32>
    %c0_1 = arith.constant 0 : index
    %c0_2 = arith.constant 0 : index
    %1 = vector.load %arg1[%c0_1, %c0_2] : memref<2x128xf32, #tpu.memory_space<vmem>>, vector<2x128xf32>
    %c0_3 = arith.constant 0 : index
    %c0_4 = arith.constant 0 : index
    %c0_5 = arith.constant 0 : index
    %2 = vector.load %arg2[%c0_3, %c0_4, %c0_5] : memref<2x8x128xf32, #tpu.memory_space<vmem>>, vector<2x8x128xf32>
    %3 = tpu.iota {dimensions = array<i32: 1>} : vector<2x8xi32>
    %c8_i32 = arith.constant 8 : i32
    %4 = vector.broadcast %c8_i32 : i32 to vector<2x8xi32>
    %5 = arith.cmpi slt, %3, %4 : vector<2x8xi32>
    %6 = tpu.iota {dimensions = array<i32: 1>} : vector<2x128xi32>
    %c8_i32_6 = arith.constant 8 : i32
    %7 = vector.broadcast %c8_i32_6 : i32 to vector<2x128xi32>
    %8 = arith.cmpi slt, %6, %7 : vector<2x128xi32>
    %cst = arith.constant 9.99999993E-9 : f32
    %9 = vector.broadcast %cst : f32 to vector<2x8xf32>
    %10 = arith.addf %0, %9 : vector<2x8xf32>
    %11 = math.log %10 : vector<2x8xf32>
    %cst_7 = arith.constant 9.99999993E-9 : f32
    %12 = vector.broadcast %cst_7 : f32 to vector<2x128xf32>
    %13 = arith.addf %1, %12 : vector<2x128xf32>
    %14 = math.log %13 : vector<2x128xf32>
    %cst_8 = arith.constant dense<0xFF800000> : vector<2x8xf32>
    %15 = vector.multi_reduction <maximumf>, %2, %cst_8 [2] : vector<2x8x128xf32> to vector<2x8xf32>
    %16 = vector.shape_cast %15 : vector<2x8xf32> to vector<2x8x1xf32>
    %17 = vector.broadcast %16 : vector<2x8x1xf32> to vector<2x8x128xf32>
    %18 = arith.subf %2, %17 : vector<2x8x128xf32>
    %19 = math.exp %18 : vector<2x8x128xf32>
    %20 = vector.shape_cast %16 : vector<2x8x1xf32> to vector<2x8xf32>
    %cst_9 = arith.constant 0.000000e+00 : f32
    %21 = vector.broadcast %cst_9 : f32 to vector<2x8xf32>
    %cst_10 = arith.constant 0.000000e+00 : f32
    %22 = vector.broadcast %cst_10 : f32 to vector<2x128xf32>
    %cst_11 = arith.constant 2.000000e+00 : f32
    %cst_12 = arith.constant 0xFF800000 : f32
    %c0_i32 = arith.constant 0 : i32
    %cst_13 = arith.constant 0x7F800000 : f32
    %23:4 = scf.while (%arg5 = %c0_i32, %arg6 = %21, %arg7 = %22, %arg8 = %cst_13) : (i32, vector<2x8xf32>, vector<2x128xf32>, f32) -> (i32, vector<2x8xf32>, vector<2x128xf32>, f32) {
      %c50_i32 = arith.constant 50 : i32
      %39 = arith.cmpi slt, %arg5, %c50_i32 : i32
      %40 = arith.cmpf oge, %arg8, %cst_11 : f32
      %41 = arith.andi %39, %40 : i1
      scf.condition(%41) %arg5, %arg6, %arg7, %arg8 : i32, vector<2x8xf32>, vector<2x128xf32>, f32
    } do {
    ^bb0(%arg5: i32, %arg6: vector<2x8xf32>, %arg7: vector<2x128xf32>, %arg8: f32):
      %39 = vector.broadcast %cst_12 : f32 to vector<2x128xf32>
      %40 = arith.select %8, %arg7, %39 : vector<2x128xi1>, vector<2x128xf32>
      %cst_22 = arith.constant dense<0xFF800000> : vector<2xf32>
      %41 = vector.multi_reduction <maximumf>, %40, %cst_22 [1] : vector<2x128xf32> to vector<2xf32>
      %42 = vector.shape_cast %41 : vector<2xf32> to vector<2x1xf32>
      %43 = vector.broadcast %42 : vector<2x1xf32> to vector<2x128xf32>
      %44 = arith.subf %arg7, %43 : vector<2x128xf32>
      %45 = math.exp %44 : vector<2x128xf32>
      %cst_23 = arith.constant 0.000000e+00 : f32
      %46 = vector.broadcast %cst_23 : f32 to vector<2x128xf32>
      %47 = arith.select %8, %45, %46 : vector<2x128xi1>, vector<2x128xf32>
      %48 = vector.shape_cast %47 : vector<2x128xf32> to vector<2x128x1xf32>
      "tpu.trace_start"() <{level = 10 : i32, message = "bnm,bmo->bno"}> : () -> ()
      %cst_24 = arith.constant dense<0.000000e+00> : vector<2x8x1xf32>
      %49 = tpu.matmul %19, %48, %cst_24 {dimension_numbers = #tpu.dot_dimension_numbers<[2], [1], [1], [2], [0, 0, 0, 1, 1, 2], [0], [0]>} : vector<2x8x128xf32>, vector<2x128x1xf32>, vector<2x8x1xf32> -> vector<2x8x1xf32>
      "tpu.trace_stop"() : () -> ()
      %50 = vector.shape_cast %49 : vector<2x8x1xf32> to vector<2x8xf32>
      %51 = vector.broadcast %42 : vector<2x1xf32> to vector<2x8xf32>
      %52 = arith.addf %20, %51 : vector<2x8xf32>
      %53 = math.log %50 : vector<2x8xf32>
      %54 = arith.addf %52, %53 : vector<2x8xf32>
      %55 = arith.subf %11, %54 : vector<2x8xf32>
      %cst_25 = arith.constant 0.000000e+00 : f32
      %56 = vector.broadcast %cst_25 : f32 to vector<2x8xf32>
      %57 = arith.select %5, %55, %56 : vector<2x8xi1>, vector<2x8xf32>
      %58 = arith.addf %57, %20 : vector<2x8xf32>
      %59 = vector.broadcast %cst_12 : f32 to vector<2x8xf32>
      %60 = arith.select %5, %58, %59 : vector<2x8xi1>, vector<2x8xf32>
      %cst_26 = arith.constant dense<0xFF800000> : vector<2xf32>
      %61 = vector.multi_reduction <maximumf>, %60, %cst_26 [1] : vector<2x8xf32> to vector<2xf32>
      %62 = vector.shape_cast %61 : vector<2xf32> to vector<2x1xf32>
      %63 = vector.broadcast %62 : vector<2x1xf32> to vector<2x8xf32>
      %64 = arith.subf %58, %63 : vector<2x8xf32>
      %65 = math.exp %64 : vector<2x8xf32>
      %cst_27 = arith.constant 0.000000e+00 : f32
      %66 = vector.broadcast %cst_27 : f32 to vector<2x8xf32>
      %67 = arith.select %5, %65, %66 : vector<2x8xi1>, vector<2x8xf32>
      %68 = vector.shape_cast %67 : vector<2x8xf32> to vector<2x1x8xf32>
      "tpu.trace_start"() <{level = 10 : i32, message = "bon,bnm->bom"}> : () -> ()
      %cst_28 = arith.constant dense<0.000000e+00> : vector<2x1x128xf32>
      %69 = tpu.matmul %68, %19, %cst_28 {dimension_numbers = #tpu.dot_dimension_numbers<[2], [1], [1], [2], [0, 0, 0, 1, 1, 2], [0], [0]>} : vector<2x1x8xf32>, vector<2x8x128xf32>, vector<2x1x128xf32> -> vector<2x1x128xf32>
      "tpu.trace_stop"() : () -> ()
      %70 = vector.shape_cast %69 : vector<2x1x128xf32> to vector<2x128xf32>
      %71 = math.log %70 : vector<2x128xf32>
      %72 = vector.broadcast %62 : vector<2x1xf32> to vector<2x128xf32>
      %73 = arith.addf %72, %71 : vector<2x128xf32>
      %74 = arith.subf %14, %73 : vector<2x128xf32>
      %cst_29 = arith.constant 0.000000e+00 : f32
      %75 = vector.broadcast %cst_29 : f32 to vector<2x128xf32>
      %76 = arith.select %8, %74, %75 : vector<2x128xi1>, vector<2x128xf32>
      %77 = arith.subf %57, %arg6 : vector<2x8xf32>
      %78 = math.absf %77 : vector<2x8xf32>
      %79 = vector.shape_cast %78 : vector<2x8xf32> to vector<1x2x8xf32>
      %cst_30 = arith.constant dense<0.000000e+00> : vector<1xf32>
      %80 = vector.multi_reduction <add>, %79, %cst_30 [1, 2] : vector<1x2x8xf32> to vector<1xf32>
      %81 = vector.shape_cast %80 : vector<1xf32> to vector<1x1x1xf32>
      %82 = vector.extract %81[0, 0, 0] : f32 from vector<1x1x1xf32>
      %c1_i32 = arith.constant 1 : i32
      %83 = arith.addi %arg5, %c1_i32 : i32
      scf.yield %83, %57, %76, %82 : i32, vector<2x8xf32>, vector<2x128xf32>, f32
    }
    %24 = vector.shape_cast %23#1 : vector<2x8xf32> to vector<2x8x1xf32>
    %25 = vector.broadcast %24 : vector<2x8x1xf32> to vector<2x8x128xf32>
    %26 = arith.addf %2, %25 : vector<2x8x128xf32>
    %27 = vector.shape_cast %23#2 : vector<2x128xf32> to vector<2x1x128xf32>
    %28 = vector.broadcast %27 : vector<2x1x128xf32> to vector<2x8x128xf32>
    %29 = arith.addf %26, %28 : vector<2x8x128xf32>
    %30 = math.exp %29 : vector<2x8x128xf32>
    %c0_14 = arith.constant 0 : index
    %c0_15 = arith.constant 0 : index
    %c0_16 = arith.constant 0 : index
    %31 = vector.load %arg4[%c0_14, %c0_15, %c0_16] : memref<2x8x128xf32, #tpu.memory_space<vmem>>, vector<2x8x128xf32>
    tpu.vector_store %arg4[%c0_14, %c0_15, %c0_16], %30 {strides = array<i32>} : memref<2x8x128xf32, #tpu.memory_space<vmem>>, vector<2x8x128xf32>,
    %32 = arith.mulf %30, %2 : vector<2x8x128xf32>
    %cst_17 = arith.constant dense<0.000000e+00> : vector<2x8xf32>
    %33 = vector.multi_reduction <add>, %32, %cst_17 [2] : vector<2x8x128xf32> to vector<2x8xf32>
    %cst_18 = arith.constant dense<0.000000e+00> : vector<2xf32>
    %34 = vector.multi_reduction <add>, %33, %cst_18 [1] : vector<2x8xf32> to vector<2xf32>
    %cst_19 = arith.constant -1.000000e-01 : f32
    %35 = vector.broadcast %cst_19 : f32 to vector<2xf32>
    %36 = arith.mulf %35, %34 : vector<2xf32>
    %37 = vector.shape_cast %36 : vector<2xf32> to vector<1x2xf32>
    %c0_20 = arith.constant 0 : index
    %c0_21 = arith.constant 0 : index
    %38 = vector.load %arg3[%c0_20, %c0_21] : memref<1x2xf32, #tpu.memory_space<vmem>>, vector<1x2xf32>
    tpu.vector_store %arg3[%c0_20, %c0_21], %37 {strides = array<i32>} : memref<1x2xf32, #tpu.memory_space<vmem>>, vector<1x2xf32>,
    return
  }
}

</mosaic_0001>

<bundles_post_ra>
// kernel: tpu_custom_call.1
= control target key start
LH: loop header
LB: loop body
LE: loop exit
PB: predicated region body
PF: predicated region fallthrough
CT: control target
= control target key end

     0   :  { %10 = vsyncpa [#allocation3], 0  ;;  %s1290_s0 = inlined_call_operand.hbm [shape: f32[2,8], index: 0, kind: input, shape index: {}]   ;;  %s1291_s1 = inlined_call_operand.hbm [shape: f32[2,128], index: 1, kind: input, shape index: {}]   ;;  %s1292_s2 = inlined_call_operand.hbm [shape: f32[2,8,128], index: 2, kind: input, shape index: {}]   ;;  %s1293_s3 = inlined_call_operand.hbm [shape: f32[1,2], index: 3, kind: output, shape index: {0}]   ;;  %s1294_s4 = inlined_call_operand.hbm [shape: f32[2,8,128], index: 4, kind: output, shape index: {1}]  }
   0x1   :  { %11 = vsyncpa [#allocation6], 0 }
   0x2   :  { %12 = vsyncpa [#allocation4], 0 }
   0x3   :  { %13 = vsyncpa [#allocation10], 0  ;;  %s1077_s15 = smov [#allocation5]   ;;  %s1078_s17 = smov [#allocation2]  }
   0x4   :  { %s30_s16 = sshll.u32 %s1077_s15, 4  ;;  %s20_s18 = sshll.u32 %s1078_s17, 4  ;;  %s31_s16 = int_to_ptr.vmem [resolvable:$true] %s30_s16  ;;  %s21_s18 = int_to_ptr.vmem [resolvable:$true] %s20_s18 }
   0x5   :  { %s953_s19 = scalar_lea.vmem %s31_s16, 32  ;;  %p958_p1 = scmp.lt.s32.totalorder %s31_s16, %s31_s16 }
   0x6   :  { %p954_p0 = scmp.ne.s32.totalorder %s31_s16, %s953_s19  ;;  %p959_p2 = scmp.lt.s32.totalorder %s953_s19, %s953_s19 }
   0x8   :  { %p960_p3 = por %p959_p2, %p958_p1 }
   0xa   :  { %p961_p4 = pnand %p960_p3, %p954_p0 }
   0xc   :  { %964 = shalt.err (!%p961_p4)
}
   0xd   :  { %33 = dma.hbm_to_vmem [thread:$0]  %s1291_s1, 32, %s31_s16, [#allocation6]  }
   0xe   :  { %s973_s22 = scalar_lea.vmem %s21_s18, 32  ;;  %p978_p6 = scmp.lt.s32.totalorder %s21_s18, %s21_s18 }
   0xf   :  { %p974_p5 = scmp.ne.s32.totalorder %s21_s18, %s973_s22  ;;  %p979_p7 = scmp.lt.s32.totalorder %s973_s22, %s973_s22 }
  0x11   :  { %p980_p8 = por %p979_p7, %p978_p6 }
  0x13   :  { %p981_p9 = pnand %p980_p8, %p974_p5 }
  0x15   :  { %984 = shalt.err (!%p981_p9)
}
  0x16   :  { %23 = dma.hbm_to_vmem [thread:$0]  %s1290_s0, 32, %s21_s18, [#allocation3]  }
  0x17   :  { %s1079_s25 = smov [#allocation7]  }
  0x18   :  { %s39_s26 = sshll.u32 %s1079_s25, 4  ;;  %s40_s26 = int_to_ptr.vmem [resolvable:$true] %s39_s26 }
  0x19   :  { %s993_s27 = scalar_lea.vmem %s40_s26, 256  ;;  %p998_p11 = scmp.lt.s32.totalorder %s40_s26, %s40_s26 }
  0x1a   :  { %p994_p10 = scmp.ne.s32.totalorder %s40_s26, %s993_s27  ;;  %p999_p12 = scmp.lt.s32.totalorder %s993_s27, %s993_s27 }
  0x1c   :  { %p1000_p13 = por %p999_p12, %p998_p11 }
  0x1e   :  { %p1001_p0 = pnand %p1000_p13, %p994_p10 }
  0x20   :  { %1004 = shalt.err (!%p1001_p0)
}
  0x21   :  { %s1080_s1 = smov 128   ;;  %s1081_s28 = smov 8  }
  0x22   :  { %45 = dma.hbm_to_vmem [thread:$0]  %s1292_s2, 256, %s40_s26, [#allocation6], %s1080_s1, %s1080_s1, %s1081_s28  }
  0x23   :  { %1057 = dma.done.wait [#allocation3], 32  }
  0x24   :  { %1058 = vsyncadd [#allocation3], 4294967264 }
  0x25   :  { %1059 = dma.done.wait [#allocation6], 288  }
  0x26   :  { %1060 = vsyncadd [#allocation6], 4294967008  ;;  %v55_v0 = vld [vmem:[#allocation2] sm:$0x3]  ;;  %v56_v1 = vld [vmem:[#allocation5] sm:$0x3]  ;;  %v59_v6 = vlaneseq }
  0x27   :  { %v1125_v2 = vld [vmem:[#allocation7] sm:$0xff]  ;;  %v62_v3 = vadd.f32 1e-08, %v55_v0  ;;  %v65_v4 = vadd.f32 1e-08, %v56_v1  ;;  %v1128_v5 = vld [vmem:[#allocation7 + $0x8] sm:$0xff] }
  0x28   :  { %68 = vmax.xlane.f32.xlu0 %v1125_v2  ;;  %v1134_v10 = vand.u32 127, %v59_v6  ;;  %v1151_v20 = vmov 0.0   ;;  %v1153_v21 = vmov 0.0   ;;  %s1155_s0 = smov 0  }
  0x29   :  { %919 = vlog2.f32 %v62_v3 }
  0x2a   :  { %921 = vlog2.f32 %v65_v4  ;;  %vm61_vm0 = vcmp.lt.s32.totalorder %v1134_v10, 8 }
  0x2c   :  { %70 = vmax.xlane.f32.xlu0 %v1128_v5 }
  0x36   :  { %v920_v7 = vpop.eup %919 }
  0x37   :  { %v922_v8 = vpop.eup %921  ;;  %v1131_v9 = vmul.f32 0.6931472, %v920_v7 }
  0x38   :  { %v1136_v11 = vmul.f32 0.6931472, %v922_v8 }
  0xb1   :  { %v1139_v12 = vpop.xlane.xlu0 %68 }
  0xb2   :  { %v72_v13 = vsub.f32 %v1125_v2, %v1139_v12 }
  0xb4   :  { %v74_v14 = vmul.f32 1.442695, %v72_v13 }
  0xb5   :  { %v1143_v15 = vpop.xlane.xlu0 %70 }
  0xb6   :  { %923 = vpow2.f32 %v74_v14  ;;  %v73_v16 = vsub.f32 %v1128_v5, %v1143_v15 }
  0xb8   :  { %v76_v17 = vmul.f32 1.442695, %v73_v16 }
  0xba   :  { %925 = vpow2.f32 %v76_v17 }
  0xc3   :  { %v1147_v18 = vpop.eup %923 }
  0xc7   :  { %v1149_v19 = vpop.eup %925 }
  0xc8 LB: > { %vm90_vm1 = vcmask 1041408   ;;  %v89_v22 = vsel %vm61_vm0, %v1067_v20, -inf  ;;  %v1082_v24 = vmov 0.0   ;;  %v1172_v28 = vshrl.u32 %v59_v6, 7  ;;  %s626_s0 = sadd.s32 1, %s1075_s0   ;;  %s1075_s0 = sphi %s1155_s0, %s626_s0   ;;  %v1071_v21 = vphi %v1153_v21, %v1296_v21   ;;  %v1067_v20 = vphi %v1151_v20, %v1295_v20  }
  0xc9   : > { %v91_v23 = vsel %vm90_vm1, %v89_v22, -inf  ;;  %802 = vmatprep.subr.mxu0 %v1082_v24  ;;  %837 = vmatprep.subr.mxu1 %v1082_v24  ;;  %vm1083_vm2 = vmmov 0   ;;  %v1084_v4 = vmov 0   ;;  %vm407_vm3 = vcmask 1041409   ;;  %p83_p1 = scmp.lt.s32.totalorder %s626_s0, 50 }
  0xca   : > { %92 = vmax.xlane.f32.xlu0 %v91_v23  ;;  %v1175_v30 = vsub.s32 0, %v1172_v28  ;;  %v1178_v31 = vsub.s32 1, %v1172_v28  ;;  %834 = vmatprep.mubr.msk.f32.mxu0 %vm1083_vm2, %v1082_v24  ;;  %vm426_vm4 = vcmask 58368   ;;  %vm457_vm5 = vcmask 64512  }
  0xcb   : > { %869 = vmatprep.mubr.msk.f32.mxu1 %vm1083_vm2, %v1082_v24  ;;  %927 = vset.pattern.permute.xlu0 %v1084_v4 }
  0xcc   : > { %928 = vset.pattern.permute.xlu1 %v1084_v4 }
 0x153   : > { %v1168_v25 = vpop.xlane.xlu0 %92 }
 0x154   : > { %v94_v26 = vsub.f32 %v1067_v20, %v1168_v25  ;;  %v376_v13 = vrot.slane %v1168_v25, %v1175_v30 }
 0x156   : > { %v95_v27 = vmul.f32 1.442695, %v94_v26  ;;  %v383_v16 = vadd.f32 %v376_v13, %v1139_v12 }
 0x158   : > { %929 = vpow2.f32 %v95_v27 }
 0x165   : > { %v930_v29 = vpop.eup %929 }
 0x166   : > { %v97_v32 = vsel %vm61_vm0, %v930_v29, 0.0 }
 0x167   : > { %v101_v33 = vrot.slane %v97_v32, %v1175_v30  ;;  %v168_v34 = vrot.slane %v97_v32, %v1178_v31 }
 0x169   : > { %230 = vbcast.lane.b32.xlu1 %v168_v34, 376  ;;  %163 = vbcast.lane.b32.xlu0 %v101_v33, 376 }
 0x16d   : > { %159 = vbcast.lane.b32.xlu1 %v101_v33, 368  ;;  %147 = vbcast.lane.b32.xlu0 %v101_v33, 344 }
 0x171   : > { %226 = vbcast.lane.b32.xlu1 %v168_v34, 368  ;;  %143 = vbcast.lane.b32.xlu0 %v101_v33, 336 }
 0x175   : > { %155 = vbcast.lane.b32.xlu1 %v101_v33, 360  ;;  %139 = vbcast.lane.b32.xlu0 %v101_v33, 328 }
 0x179   : > { %222 = vbcast.lane.b32.xlu1 %v168_v34, 360  ;;  %135 = vbcast.lane.b32.xlu0 %v101_v33, 320 }
 0x17d   : > { %151 = vbcast.lane.b32.xlu1 %v101_v33, 352  ;;  %131 = vbcast.lane.b32.xlu0 %v101_v33, 312 }
 0x181   : > { %218 = vbcast.lane.b32.xlu1 %v168_v34, 352  ;;  %127 = vbcast.lane.b32.xlu0 %v101_v33, 304 }
 0x185   : > { %214 = vbcast.lane.b32.xlu1 %v168_v34, 344  ;;  %123 = vbcast.lane.b32.xlu0 %v101_v33, 296 }
 0x189   : > { %210 = vbcast.lane.b32.xlu1 %v168_v34, 336  ;;  %119 = vbcast.lane.b32.xlu0 %v101_v33, 288 }
 0x18d   : > { %206 = vbcast.lane.b32.xlu1 %v168_v34, 328  ;;  %115 = vbcast.lane.b32.xlu0 %v101_v33, 280 }
 0x191   : > { %202 = vbcast.lane.b32.xlu1 %v168_v34, 320  ;;  %111 = vbcast.lane.b32.xlu0 %v101_v33, 272 }
 0x195   : > { %198 = vbcast.lane.b32.xlu1 %v168_v34, 312  ;;  %107 = vbcast.lane.b32.xlu0 %v101_v33, 264 }
 0x199   : > { %194 = vbcast.lane.b32.xlu1 %v168_v34, 304  ;;  %103 = vbcast.lane.b32.xlu0 %v101_v33, 256  ;;  %v1236_v33 = vsub.s32 %v1134_v10, %v1172_v28 }
 0x19d   : > { %190 = vbcast.lane.b32.xlu1 %v168_v34, 296 }
 0x1a1   : > { %186 = vbcast.lane.b32.xlu1 %v168_v34, 288 }
 0x1a5   : > { %182 = vbcast.lane.b32.xlu1 %v168_v34, 280 }
 0x1a9   : > { %178 = vbcast.lane.b32.xlu1 %v168_v34, 272 }
 0x1ad   : > { %174 = vbcast.lane.b32.xlu1 %v168_v34, 264 }
 0x1b1   : > { %170 = vbcast.lane.b32.xlu1 %v168_v34, 256 }
 0x1db   : > { %v231_v35 = vpop.permute.xlu1 %230  ;;  %v164_v36 = vpop.permute.xlu0 %163 }
 0x1dc   : > { %803 = vmatpush3.msra.mxu0 %v164_v36  ;;  %838 = vmatpush3.msra.mxu1 %v231_v35  ;;  %v417_v36 = vrot.slane %v1139_v12, %v1236_v33 }
 0x1dd   : > { %804 = vmatprep.subr.mxu0 %v1082_v24  ;;  %839 = vmatprep.subr.mxu1 %v1082_v24 }
 0x1df   : > { %v160_v37 = vpop.permute.xlu1 %159  ;;  %v148_v38 = vpop.permute.xlu0 %147 }
 0x1e0   : > { %805 = vmatpush3.msra.mxu0 %v160_v37  ;;  %v421_v37 = vrot.slane %v1143_v15, %v1236_v33 }
 0x1e1   : > { %806 = vmatprep.subr.mxu0 %v1082_v24 }
 0x1e3   : > { %v227_v39 = vpop.permute.xlu1 %226  ;;  %v144_v40 = vpop.permute.xlu0 %143 }
 0x1e4   : > { %840 = vmatpush3.msra.mxu1 %v227_v39 }
 0x1e5   : > { %841 = vmatprep.subr.mxu1 %v1082_v24 }
 0x1e7   : > { %v156_v41 = vpop.permute.xlu1 %155  ;;  %v140_v42 = vpop.permute.xlu0 %139 }
 0x1e8   : > { %807 = vmatpush3.msra.mxu0 %v156_v41  ;;  %v422_v41 = vsel %vm407_vm3, %v421_v37, %v417_v36 }
 0x1e9   : > { %808 = vmatprep.subr.mxu0 %v1082_v24 }
 0x1eb   : > { %v223_v43 = vpop.permute.xlu1 %222  ;;  %v136_v44 = vpop.permute.xlu0 %135 }
 0x1ec   : > { %842 = vmatpush3.msra.mxu1 %v223_v43 }
 0x1ed   : > { %843 = vmatprep.subr.mxu1 %v1082_v24 }
 0x1ef   : > { %v152_v45 = vpop.permute.xlu1 %151  ;;  %v132_v46 = vpop.permute.xlu0 %131 }
 0x1f0   : > { %809 = vmatpush3.msra.mxu0 %v152_v45 }
 0x1f1   : > { %810 = vmatprep.subr.mxu0 %v1082_v24 }
 0x1f2   : > { %811 = vmatpush3.msra.mxu0 %v148_v38 }
 0x1f3   : > { %v219_v47 = vpop.permute.xlu1 %218  ;;  %812 = vmatprep.subr.mxu0 %v1082_v24  ;;  %v128_v48 = vpop.permute.xlu0 %127 }
 0x1f4   : > { %813 = vmatpush3.msra.mxu0 %v144_v40  ;;  %844 = vmatpush3.msra.mxu1 %v219_v47 }
 0x1f5   : > { %814 = vmatprep.subr.mxu0 %v1082_v24  ;;  %845 = vmatprep.subr.mxu1 %v1082_v24 }
 0x1f6   : > { %815 = vmatpush3.msra.mxu0 %v140_v42 }
 0x1f7   : > { %v215_v49 = vpop.permute.xlu1 %214  ;;  %816 = vmatprep.subr.mxu0 %v1082_v24  ;;  %v124_v50 = vpop.permute.xlu0 %123 }
 0x1f8   : > { %817 = vmatpush3.msra.mxu0 %v136_v44  ;;  %846 = vmatpush3.msra.mxu1 %v215_v49 }
 0x1f9   : > { %818 = vmatprep.subr.mxu0 %v1082_v24  ;;  %847 = vmatprep.subr.mxu1 %v1082_v24 }
 0x1fa   : > { %819 = vmatpush3.msra.mxu0 %v132_v46 }
 0x1fb   : > { %v211_v51 = vpop.permute.xlu1 %210  ;;  %820 = vmatprep.subr.mxu0 %v1082_v24  ;;  %v120_v52 = vpop.permute.xlu0 %119 }
 0x1fc   : > { %821 = vmatpush3.msra.mxu0 %v128_v48  ;;  %848 = vmatpush3.msra.mxu1 %v211_v51 }
 0x1fd   : > { %822 = vmatprep.subr.mxu0 %v1082_v24  ;;  %849 = vmatprep.subr.mxu1 %v1082_v24 }
 0x1fe   : > { %823 = vmatpush3.msra.mxu0 %v124_v50 }
 0x1ff   : > { %v207_v53 = vpop.permute.xlu1 %206  ;;  %824 = vmatprep.subr.mxu0 %v1082_v24  ;;  %v116_v54 = vpop.permute.xlu0 %115 }
 0x200   : > { %825 = vmatpush3.msra.mxu0 %v120_v52  ;;  %850 = vmatpush3.msra.mxu1 %v207_v53 }
 0x201   : > { %826 = vmatprep.subr.mxu0 %v1082_v24  ;;  %851 = vmatprep.subr.mxu1 %v1082_v24 }
 0x202   : > { %827 = vmatpush3.msra.mxu0 %v116_v54 }
 0x203   : > { %v203_v55 = vpop.permute.xlu1 %202  ;;  %828 = vmatprep.subr.mxu0 %v1082_v24  ;;  %v112_v56 = vpop.permute.xlu0 %111 }
 0x204   : > { %829 = vmatpush3.msra.mxu0 %v112_v56  ;;  %852 = vmatpush3.msra.mxu1 %v203_v55  ;;  %v1085_v56 = vmov 1966171168  }
 0x205   : > { %853 = vmatprep.subr.mxu1 %v1082_v24  ;;  %830 = vmatprep.subr.mxu0 %v1082_v24 }
 0x207   : > { %v199_v57 = vpop.permute.xlu1 %198  ;;  %v108_v58 = vpop.permute.xlu0 %107 }
 0x208   : > { %831 = vmatpush3.msra.mxu0 %v108_v58  ;;  %854 = vmatpush3.msra.mxu1 %v199_v57 }
 0x209   : > { %855 = vmatprep.subr.mxu1 %v1082_v24  ;;  %832 = vmatprep.subr.mxu0 %v1082_v24 }
 0x20b   : > { %v195_v59 = vpop.permute.xlu1 %194  ;;  %v104_v60 = vpop.permute.xlu0 %103 }
 0x20c   : > { %833 = vmatpush3.msra.mxu0 %v104_v60  ;;  %856 = vmatpush3.msra.mxu1 %v195_v59 }
 0x20d   : > { %835 = vmatmul.mubr.f32.vlgmr.msra.gmra.mxu0 %v1147_v18  ;;  %857 = vmatprep.subr.mxu1 %v1082_v24 }
 0x20e   : > { %872 = vmatprep.subr.mxu0 %v1082_v24  ;;  %874 = vmatprep.mubr.msk.f32.mxu0 %vm1083_vm2, %v1082_v24 }
 0x20f   : > { %v191_v61 = vpop.permute.xlu1 %190  ;;  %873 = vmatpush3.msra.mxu0 %v1147_v18 }
 0x210   : > { %858 = vmatpush3.msra.mxu1 %v191_v61 }
 0x211   : > { %859 = vmatprep.subr.mxu1 %v1082_v24 }
 0x213   : > { %v187_v62 = vpop.permute.xlu1 %186 }
 0x214   : > { %860 = vmatpush3.msra.mxu1 %v187_v62 }
 0x215   : > { %861 = vmatprep.subr.mxu1 %v1082_v24 }
 0x217   : > { %v183_v63 = vpop.permute.xlu1 %182 }
 0x218   : > { %862 = vmatpush3.msra.mxu1 %v183_v63 }
 0x219   : > { %863 = vmatprep.subr.mxu1 %v1082_v24 }
 0x21b   : > { %v179_v0 = vpop.permute.xlu1 %178 }
 0x21c   : > { %864 = vmatpush3.msra.mxu1 %v179_v0 }
 0x21d   : > { %865 = vmatprep.subr.mxu1 %v1082_v24 }
 0x21f   : > { %v175_v1 = vpop.permute.xlu1 %174 }
 0x220   : > { %866 = vmatpush3.msra.mxu1 %v175_v1 }
 0x221   : > { %867 = vmatprep.subr.mxu1 %v1082_v24 }
 0x223   : > { %v171_v3 = vpop.permute.xlu1 %170 }
 0x224   : > { %868 = vmatpush3.msra.mxu1 %v171_v3 }
 0x225   : > { %870 = vmatmul.mubr.f32.vlgmr.msra.gmra.mxu1 %v1149_v19  ;;  %877 = vmatprep.subr.mxu1 %v1082_v24 }
 0x226   : > { %878 = vmatpush3.msra.mxu1 %v1149_v19  ;;  %879 = vmatprep.mubr.msk.f32.mxu1 %vm1083_vm2, %v1082_v24  ;;  %v380_v24 = vrot.slane %v1168_v25, %v1178_v31 }
 0x228   : > { %v384_v27 = vadd.f32 %v380_v24, %v1143_v15 }
 0x2cd   : > { %v298_v7 = vpop.f32.mrf.mxu0 }
 0x2ce   : > { %931 = vlog2.f32 %v298_v7 }
 0x2cf   : > { %v836_v8 = vpop.f32.mrf.mxu0 }
 0x2db   : > { %v932_v14 = vpop.eup %931 }
 0x2dc   : > { %v386_v17 = vmul.f32 0.6931472, %v932_v14 }
 0x2de   : > { %v389_v20 = vadd.f32 %v386_v17, %v383_v16 }
 0x2e0   : > { %394 = vperm.xlu0 %927, %v389_v20  }
 0x2e5   : > { %v368_v22 = vpop.f32.mrf.mxu1 }
 0x2e6   : > { %933 = vlog2.f32 %v368_v22 }
 0x2e7   : > { %v871_v23 = vpop.f32.mrf.mxu1 }
 0x2f3   : > { %v934_v26 = vpop.eup %933 }
 0x2f4   : > { %v388_v29 = vmul.f32 0.6931472, %v934_v26 }
 0x2f6   : > { %v390_v32 = vadd.f32 %v388_v29, %v384_v27 }
 0x2f8   : > { %397 = vperm.xlu1 %928, %v390_v32  }
 0x35b   : > { %v395_v34 = vpop.permute.xlu0 %394 }
 0x35c   : > { %v402_v25 = vrot.slane %v395_v34, %v1236_v33 }
 0x373   : > { %v398_v35 = vpop.permute.xlu1 %397 }
 0x374   : > { %v406_v38 = vrot.slane %v398_v35, %v1236_v33 }
 0x376   : > { %v408_v39 = vsel %vm407_vm3, %v406_v38, %v402_v25 }
 0x377   : > { %v410_v40 = vsub.f32 %v1131_v9, %v408_v39 }
 0x379   : > { %v411_v42 = vsel %vm61_vm0, %v410_v40, 0.0  }
 0x37a   : > { %v424_v43 = vadd.f32 %v422_v41, %v411_v42  ;;  %v614_v44 = vsub.f32 %v411_v42, %v1071_v21  ;;  %v436_v21 = vunpack.c.l.s4 %v1085_v56 }
 0x37c   : > { %v425_v45 = vsel %vm61_vm0, %v424_v43, -inf  ;;  %v615_v46 = vand.u32 2147483647, %v614_v44  ;;  %v437_v59 = vunpack.c.0.s8 %v436_v21  ;;  %v1296_v21 = vmov %v411_v42 }
 0x37d   : > { %v427_v47 = vsel %vm426_vm4, %v425_v45, -inf }
 0x37e   : > { %428 = vmax.xlane.f32.xlu1 %v427_v47  ;;  %v616_v48 = vsel %vm426_vm4, %v615_v46, 0.0  ;;  %v440_v61 = vsub.s32 %v437_v59, %v1172_v28 }
 0x37f   : > { %617 = vadd.xlane.f32.xlu0 %v616_v48 }
 0x407   : > { %v429_v49 = vpop.xlane.xlu1 %428 }
 0x408   : > { %v430_v50 = vsub.f32 %v424_v43, %v429_v49  ;;  %v618_v51 = vpop.xlane.xlu0 %617 }
 0x409   : > { %v619_v52 = vrot.slane %v618_v51, 4 }
 0x40a   : > { %v431_v53 = vmul.f32 1.442695, %v430_v50 }
 0x40b   : > { %v620_v54 = vadd.f32 %v619_v52, %v618_v51 }
 0x40c   : > { %935 = vpow2.f32 %v431_v53 }
 0x40d   : > { %v621_v55 = vrot.slane %v620_v54, 2 }
 0x40f   : > { %v622_v57 = vadd.f32 %v621_v55, %v620_v54 }
 0x411   : > { %v623_v58 = vrot.slane %v622_v57, 1 }
 0x413   : > { %v624_v60 = vadd.f32 %v623_v58, %v622_v57 }
 0x415   : > { %882 = vpush %v624_v60 }
 0x419   : > { %v936_v62 = vpop.eup %935 }
 0x41a   : > { %v433_v63 = vsel %vm61_vm0, %v936_v62, 0.0 }
 0x41b   : > { %v441_v0 = vrot.slane %v433_v63, %v440_v61 }
 0x41d   : > { %v442_v1 = vcombine.high %v441_v0, %v441_v0  ;;  %v449_v3 = vrot.slane %v441_v0, %v440_v61 }
 0x41f   : > { %v456_v4 = vrot.slane %v442_v1, %v440_v61  ;;  %875 = vmatmul.mubr.msk.f32.vlgmr.msra.gmra.mxu0 %vm457_vm5, %v449_v3 }
 0x421   : > { %880 = vmatmul.mubr.msk.f32.vlgmr.msra.gmra.mxu1 %vm457_vm5, %v456_v4 }
 0x446   : > { %s883_s2 = spop %882 }
 0x447   : > { %p84_p2 = scmp.ge.f32.partialorder %s883_s2, 2.0 }
 0x449   : > { %p85_p3 = pnand %p84_p2, %p83_p1 }
 0x44a   :  { %v630_v29 = vrot.slane (%p85_p3), %v411_v42, %v1175_v30  ;;  %v637_v32 = vrot.slane (%p85_p3), %v411_v42, %v1178_v31  ;;  %s1086_s5 = smov (%p85_p3), [#allocation9]  }
 0x44b   :  { %s731_s6 = sshll.u32 (%p85_p3), %s1086_s5, 4  ;;  %s732_s6 = int_to_ptr.vmem [resolvable:$true] %s731_s6 }
 0x44c   :  { %632 = vbcast.lane.b32.xlu0 (%p85_p3), %v630_v29, 256  ;;  %s1005_s7 = scalar_lea.vmem (%p85_p3), %s732_s6, 256  ;;  %p1010_p5 = scmp.lt.s32.totalorder (%p85_p3), %s732_s6, %s732_s6 }
 0x44d   :  { %p1006_p4 = scmp.ne.s32.totalorder (%p85_p3), %s732_s6, %s1005_s7  ;;  %p1011_p6 = scmp.lt.s32.totalorder (%p85_p3), %s1005_s7, %s1005_s7 }
 0x44f   :  { %p1012_p7 = por (%p85_p3), %p1011_p6, %p1010_p5 }
 0x450   :  { %639 = vbcast.lane.b32.xlu0 (%p85_p3), %v637_v32, 256 }
 0x451   :  { %p1013_p8 = pnand (%p85_p3), %p1012_p7, %p1006_p4 }
 0x4be   :  { %v633_v38 = vpop.permute.xlu0 (%p85_p3), %632 }
 0x4bf   :  { %v641_v39 = vadd.f32 (%p85_p3), %v633_v38, %v1125_v2 }
 0x4c2   :  { %v640_v43 = vpop.permute.xlu0 (%p85_p3), %639 }
 0x4c3   :  { %v642_v6 = vadd.f32 (%p85_p3), %v640_v43, %v1128_v5 }
 0x4df   : > { %v526_v7 = vpop.f32.mrf.mxu0 }
 0x4e0   : > { %937 = vlog2.f32 %v526_v7 }
 0x4e1   : > { %v876_v8 = vpop.f32.mrf.mxu0  ;;  %v598_v13 = vpop.f32.mrf.mxu1 }
 0x4e2   : > { %939 = vlog2.f32 %v598_v13 }
 0x4e3   : > { %v881_v14 = vpop.f32.mrf.mxu1 }
 0x4ed   : > { %v938_v28 = vpop.eup %937 }
 0x4ee   : > { %v603_v20 = vmul.f32 0.6931472, %v938_v28 }
 0x4ef   : > { %v940_v16 = vpop.eup %939 }
 0x4f0   : > { %v605_v17 = vmul.f32 0.6931472, %v940_v16 }
 0x4f2   : > { %v608_v22 = vrot.slane %v605_v17, 7 }
 0x4f4   : > { %v609_v23 = vsel %vm407_vm3, %v608_v22, %v603_v20 }
 0x4f5   : > { %v611_v24 = vadd.f32 %v609_v23, %v429_v49 }
 0x4f6   :  { %88 = sbr.rel (!%p85_p3) target bundleno = 200 (0xc8), region = 59 }
 0x4f7   : > { %v612_v26 = vsub.f32 %v1136_v11, %v611_v24 }
 0x4f9   : > { %v613_v27 = vsel %vm61_vm0, %v612_v26, 0.0  }
 0x4fa   : > { %v1295_v20 = vmov %v613_v27  ;;  %v650_v34 = vrot.slane (%p85_p3), %v613_v27, %v440_v61 }
 0x4fc   :  { %v658_v35 = vrot.slane %v650_v34, %v440_v61  ;;  %v651_v36 = vcombine.high %v650_v34, %v650_v34 }
 0x4fe   :  { %v669_v37 = vrot.slane %v658_v35, %v1175_v30  ;;  %v665_v25 = vrot.slane %v651_v36, %v440_v61 }
 0x500   :  { %v676_v40 = vadd.f32 %v669_v37, %v641_v39  ;;  %v673_v41 = vrot.slane %v665_v25, %v1175_v30 }
 0x502   :  { %v678_v44 = vmul.f32 1.442695, %v676_v40  ;;  %v677_v9 = vadd.f32 %v673_v41, %v642_v6 }
 0x504   :  { %941 = vpow2.f32 %v678_v44  ;;  %v680_v10 = vmul.f32 1.442695, %v677_v9 }
 0x506   :  { %943 = vpow2.f32 %v680_v10 }
 0x511   :  { %v942_v11 = vpop.eup %941 }
 0x512   :  { %682 = vst [vmem:[#allocation9] sm:$0xff] %v942_v11  ;;  %v684_v12 = vmul.f32 %v942_v11, %v1125_v2 }
 0x513   :  { %v944_v15 = vpop.eup %943 }
 0x514   :  { %686 = vadd.xlane.f32.xlu1 %v684_v12  ;;  %683 = vst [vmem:[#allocation9 + $0x8] sm:$0xff] %v944_v15  ;;  %v685_v18 = vmul.f32 %v944_v15, %v1128_v5 }
 0x518   :  { %688 = vadd.xlane.f32.xlu1 %v685_v18 }
 0x59d   :  { %v687_v19 = vpop.xlane.xlu1 %686 }
 0x59e   :  { %v695_v31 = vrot.slane %v687_v19, %v1236_v33 }
 0x5a1   :  { %v689_v30 = vpop.xlane.xlu1 %688 }
 0x5a2   :  { %v699_v42 = vrot.slane %v689_v30, %v1236_v33 }
 0x5a4   :  { %v701_v45 = vsel %vm407_vm3, %v699_v42, %v695_v31 }
 0x5a5   :  { %v704_v46 = vsel %vm426_vm4, %v701_v45, 0.0 }
 0x5a6   :  { %705 = vadd.xlane.f32.xlu0 %v704_v46 }
 0x5a7   :  { %1016 = shalt.err (!%p1013_p8)
}
 0x5a8   :  { %737 = dma.vmem_to_hbm [thread:$0]  %s732_s6, 256, %s1294_s4, [#allocation10], %s1080_s1, %s1080_s1, %s1081_s28   ;;  %vm714_vm6 = vcmask 8192  }
 0x5a9   :  { %s1087_s10 = smov [#allocation8]  }
 0x5aa   :  { %s722_s11 = sshll.u32 %s1087_s10, 4  ;;  %s723_s11 = int_to_ptr.vmem [resolvable:$true] %s722_s11 }
 0x5ab   :  { %s1025_s12 = scalar_lea.vmem %s723_s11, 16  ;;  %s1029_s13 = scalar_lea.vmem %s723_s11, 32 }
 0x5ac   :  { %p1026_p9 = scmp.ne.s32.totalorder %s723_s11, %s1025_s12  ;;  %p1030_p10 = scmp.lt.s32.totalorder %s723_s11, %s723_s11 }
 0x5ad   :  { %p1031_p11 = scmp.lt.s32.totalorder %s1029_s13, %s1025_s12 }
 0x5af   :  { %p1032_p12 = por %p1031_p11, %p1030_p10 }
 0x5b1   :  { %p1033_p13 = pnand %p1032_p12, %p1026_p9 }
 0x62f   :  { %v706_v2 = vpop.xlane.xlu0 %705 }
 0x630   :  { %v707_v5 = vmul.f32 -0.1, %v706_v2 }
 0x632   :  { %v712_v47 = vrot.slane %v707_v5, %v1236_v33 }
 0x634   :  { %715 = vst.msk [vmem:[#allocation8] sm:$0x1] %vm714_vm6, %v712_v47 }
 0x635   :  { %1036 = shalt.err (!%p1033_p13)
}
 0x636   :  { %725 = dma.vmem_to_hbm [thread:$0]  %s723_s11, 16, %s1293_s3, [#allocation4]  }
 0x637   :  { %1061 = dma.done.wait [#allocation4], 16  }
 0x638   :  { %1062 = vsyncadd [#allocation4], 4294967280 }
 0x639   :  { %1063 = dma.done.wait [#allocation10], 256  }
 0x63a   :  { %1064 = vsyncadd [#allocation10], 4294967040 }
 0x63b   :  { %744 = vsyncpa [#allocation3], 1 }
 0x63c   :  { %745 = vsyncpa [#allocation6], 1 }
 0x63d   :  { %746 = vsyncpa [#allocation4], 1 }
 0x63e   :  { %747 = vsyncpa [#allocation10], 1 }

</bundles_post_ra>
